<compile_context>
chip_gen: v7x
topology: tpu7x:2x2x1
jax: 0.10.0
libtpu: 0.0.40
codegen_flags: <defaults>
</compile_context>

<pallas_src>
import jax
import jax.numpy as jnp
from jax.experimental import pallas as pl
from jax.experimental.pallas import tpu as pltpu


def _round_up(x, m):
    return (x + m - 1) // m * m


def _tpu_generation_params():
    """Returns (n_tensorcores, target input-block bytes, vmem-limit cap)."""
    kind = ""
    try:
        kind = jax.devices()[0].device_kind.lower()
    except Exception:
        pass
    if "7" in kind:                                   # v7x: 2 TCs, 64 MiB VMEM/TC
        return 2, 8 << 20, 48 << 20
    if "v6" in kind:                                  # v6e: 1 TC, 128 MiB VMEM
        return 1, 8 << 20, 64 << 20
    if "v5" in kind and ("lite" in kind or "5e" in kind):   # v5e: 1 TC, 128 MiB
        return 1, 2 << 20, 32 << 20
    return 1, 4 << 20, 32 << 20                       # unknown: conservative


def _make_rmm_kernel(batch, tile_b, tiles_per_par, needs_mask):
    """Builds the kernel with static batch / tiling constants closed over."""

    def kernel(pred_ref, target_ref, w_ref, out_ref, acc_ref):
        # pred_ref, target_ref : (tb, FD) input tiles
        # w_ref                : (1, FD) f32 weights (alpha**f repeated over D)
        # out_ref              : (1, 1) SMEM partial sum for this parallel slice
        # acc_ref              : (8, FD) f32 resident VMEM accumulator
        c = pl.program_id(0)
        i = pl.program_id(1)

        @pl.when(i == 0)
        def _init():
            acc_ref[...] = jnp.zeros_like(acc_ref)

        p = pred_ref[...].astype(jnp.float32)
        t = target_ref[...].astype(jnp.float32)
        d = p - t

        if needs_mask:
            # Unclamped global row offset of this tile. Rows >= batch (including
            # every row of a duplicated clamped tile) contribute exactly 0, and
            # jnp.where blocks any garbage/NaN in the out-of-bounds region.
            row_start = (c * tiles_per_par + i) * tile_b
            rows = jax.lax.broadcasted_iota(jnp.int32, d.shape, 0)
            d = jnp.where(rows + row_start < batch, d, 0.0)

        sq = d * d                          # plain squared error; weights applied
        tb, fd = sq.shape                   # once in the epilogue below.
        # Fold batch rows into the resident (8, FD) accumulator with VPU adds
        # (splitting the leading sublane-major dim is layout-free).
        acc_ref[...] += jnp.sum(sq.reshape(tb // 8, 8, fd), axis=0)

        @pl.when(i == pl.num_programs(1) - 1)
        def _finalize():
            out_ref[0, 0] = jnp.sum(acc_ref[...] * w_ref[...])

    return kernel


def rmm_loss(pred, target, alpha=0.9, forecast=8):
    """Pallas implementation of RMMLoss.forward.

    pred, target: (B, F, D) arrays with F == forecast. Returns scalar f32 loss.
    """
    assert pred.shape == target.shape
    B, F, D = pred.shape
    assert F == forecast, f"forecast axis mismatch: {F} != {forecast}"
    FD = F * D
    n_elems = B * F * D  # exact element count for the mean (never padded)

    # Lane-dense flatten (contiguous reshape, no copy).
    p2 = pred.reshape(B, FD)
    t2 = target.reshape(B, FD)

    # weights[k] = alpha**k, broadcast over D: flat column f*D + d gets alpha**f.
    weights = jnp.asarray([alpha ** k for k in range(forecast)], dtype=jnp.float32)
    w_flat = jnp.repeat(weights, D).reshape(1, FD)

    # ---- Generation-aware tile selection -------------------------------------
    itemsize = pred.dtype.itemsize
    row_align = 8 if itemsize >= 4 else (16 if itemsize == 2 else 32)
    n_par, target_block_bytes, vmem_cap = _tpu_generation_params()

    b_aligned = _round_up(B, row_align)
    target_tb = max(row_align,
                    (target_block_bytes // (FD * itemsize)) // row_align * row_align)
    # Keep >= 2 steps per parallel slice so the BlockSpec double buffer actually
    # overlaps DMA with compute, and so ragged coverage stays small.
    min_steps = 2
    cap_tb = _round_up(pl.cdiv(b_aligned, n_par * min_steps), row_align)
    tb = max(row_align, min(target_tb, cap_tb))
    assert tb % 8 == 0  # required by the (tb//8, 8, FD) accumulation reshape

    n_tiles = pl.cdiv(B, tb)            # tiles that actually contain data
    if n_tiles < n_par:                 # not enough work to split across cores
        n_par = 1
    tiles_per_par = pl.cdiv(n_tiles, n_par)
    last_tile = n_tiles - 1
    # Masking is only compiled in when the grid covers rows beyond B.
    needs_mask = (n_par * tiles_per_par * tb) != B

    # Clamp the block index so duplicated trailing tiles (when n_tiles doesn't
    # split evenly across slices) re-read a valid tile; the in-kernel row mask
    # zeroes their contribution.
    def in_map(c, i):
        return (jnp.minimum(c * tiles_per_par + i, last_tile), 0)

    # VMEM budget derived from the chosen block: 2 inputs x 2 buffers + margin.
    block_bytes = tb * FD * itemsize
    vmem_limit = min(vmem_cap, max(16 << 20, 4 * block_bytes + (4 << 20)))

    kernel = _make_rmm_kernel(B, tb, tiles_per_par, needs_mask)

    partials = pl.pallas_call(
        kernel,
        out_shape=jax.ShapeDtypeStruct((n_par, 1), jnp.float32),
        grid=(n_par, tiles_per_par),
        in_specs=[
            pl.BlockSpec((tb, FD), in_map),
            pl.BlockSpec((tb, FD), in_map),
            pl.BlockSpec((1, FD), lambda c, i: (0, 0)),
        ],
        out_specs=pl.BlockSpec(
            (1, 1), lambda c, i: (c, 0), memory_space=pltpu.MemorySpace.SMEM
        ),
        scratch_shapes=[pltpu.VMEM((8, FD), jnp.float32)],
        compiler_params=pltpu.CompilerParams(
            dimension_semantics=("parallel", "arbitrary"),
            vmem_limit_bytes=vmem_limit,
        ),
    )(p2, t2, w_flat)

    return jnp.sum(partials) / jnp.float32(n_elems)


if __name__ == "__main__":
    key = jax.random.PRNGKey(0)
    k1, k2 = jax.random.split(key)

    # Small shape consistent with the module: batch=2, forecast=8, feature dim=32.
    B, F, D = 2, 8, 32
    pred = jax.random.normal(k1, (B, F, D), dtype=jnp.float32)
    target = jax.random.normal(k2, (B, F, D), dtype=jnp.float32)

    loss = rmm_loss(pred, target, alpha=0.9, forecast=F)
    loss = jax.block_until_ready(loss)

    weights = jnp.asarray([0.9 ** k for k in range(F)], dtype=jnp.float32)
    ref = jnp.mean((pred - target) ** 2 * weights.reshape(1, -1, 1))
    assert jnp.allclose(loss, ref, rtol=1e-5, atol=1e-6), (loss, ref)

    # Also exercise the multi-tile / ragged-coverage (masked, no-pad) path.
    B2 = 3000
    kb1, kb2 = jax.random.split(jax.random.PRNGKey(1))
    pred_l = jax.random.normal(kb1, (B2, F, D), dtype=jnp.float32)
    target_l = jax.random.normal(kb2, (B2, F, D), dtype=jnp.float32)
    loss_l = jax.block_until_ready(rmm_loss(pred_l, target_l, alpha=0.9, forecast=F))
    ref_l = jnp.mean((pred_l - target_l) ** 2 * weights.reshape(1, -1, 1))
    assert jnp.allclose(loss_l, ref_l, rtol=1e-4, atol=1e-6), (loss_l, ref_l)

    print("KERNEL_OK")
</pallas_src>

<mosaic_0001>
module attributes {stable_mosaic.version = 11 : i64} {
  func.func @kernel(%arg0: i32, %arg1: i32, %arg2: memref<8x256xf32, #tpu.memory_space<vmem>>, %arg3: memref<8x256xf32, #tpu.memory_space<vmem>>, %arg4: memref<1x256xf32, #tpu.memory_space<vmem>>, %arg5: memref<1x1xf32, #tpu.memory_space<smem>>, %arg6: memref<8x256xf32, #tpu.memory_space<vmem>>) attributes {dimension_semantics = [#tpu.dimension_semantics<parallel>, #tpu.dimension_semantics<arbitrary>], iteration_bounds = array<i64: 1, 1>, scalar_prefetch = 0 : i64, scratch_operands = 1 : i64, tpu.core_type = #tpu.core_type<tc>, window_params = [{transform_indices = @transform_0, window_bounds = array<i64: 8, 256>}, {transform_indices = @transform_1, window_bounds = array<i64: 8, 256>}, {pipeline_mode = #tpu.pipeline_mode<synchronous>, transform_indices = @transform_2, window_bounds = array<i64: 1, 256>}, {transform_indices = @transform_3, window_bounds = array<i64: 1, 1>}]} {
    %c0_i32 = arith.constant 0 : i32
    %0 = arith.cmpi eq, %arg1, %c0_i32 : i32
    %1 = arith.extui %0 : i1 to i32
    %c0_i32_0 = arith.constant 0 : i32
    %2 = arith.cmpi ne, %1, %c0_i32_0 : i32
    scf.if %2 {
      %cst_11 = arith.constant 0.000000e+00 : f32
      %25 = vector.broadcast %cst_11 : f32 to vector<8x256xf32>
      %c0_12 = arith.constant 0 : index
      %c0_13 = arith.constant 0 : index
      %26 = vector.load %arg6[%c0_12, %c0_13] : memref<8x256xf32, #tpu.memory_space<vmem>>, vector<8x256xf32>
      tpu.vector_store %arg6[%c0_12, %c0_13], %25 {strides = array<i32>} : memref<8x256xf32, #tpu.memory_space<vmem>>, vector<8x256xf32>,
    } else {
    }
    %c0 = arith.constant 0 : index
    %c0_1 = arith.constant 0 : index
    %3 = vector.load %arg2[%c0, %c0_1] : memref<8x256xf32, #tpu.memory_space<vmem>>, vector<8x256xf32>
    %c0_2 = arith.constant 0 : index
    %c0_3 = arith.constant 0 : index
    %4 = vector.load %arg3[%c0_2, %c0_3] : memref<8x256xf32, #tpu.memory_space<vmem>>, vector<8x256xf32>
    %5 = arith.subf %3, %4 : vector<8x256xf32>
    %c1_i32 = arith.constant 1 : i32
    %6 = arith.muli %arg0, %c1_i32 : i32
    %7 = arith.addi %6, %arg1 : i32
    %c8_i32 = arith.constant 8 : i32
    %8 = arith.muli %7, %c8_i32 : i32
    %9 = tpu.iota {dimensions = array<i32: 0>} : vector<8x256xi32>
    %10 = vector.broadcast %8 : i32 to vector<8x256xi32>
    %11 = arith.addi %9, %10 : vector<8x256xi32>
    %c2_i32 = arith.constant 2 : i32
    %12 = vector.broadcast %c2_i32 : i32 to vector<8x256xi32>
    %13 = arith.cmpi slt, %11, %12 : vector<8x256xi32>
    %cst = arith.constant 0.000000e+00 : f32
    %14 = vector.broadcast %cst : f32 to vector<8x256xf32>
    %15 = arith.select %13, %5, %14 : vector<8x256xi1>, vector<8x256xf32>
    %16 = arith.mulf %15, %15 : vector<8x256xf32>
    %c0_4 = arith.constant 0 : index
    %c0_5 = arith.constant 0 : index
    %17 = vector.load %arg6[%c0_4, %c0_5] : memref<8x256xf32, #tpu.memory_space<vmem>>, vector<8x256xf32>
    %18 = vector.shape_cast %16 : vector<8x256xf32> to vector<1x8x256xf32>
    %cst_6 = arith.constant dense<0.000000e+00> : vector<8x256xf32>
    %19 = vector.multi_reduction <add>, %18, %cst_6 [0] : vector<1x8x256xf32> to vector<8x256xf32>
    %20 = arith.addf %17, %19 : vector<8x256xf32>
    %c0_7 = arith.constant 0 : index
    %c0_8 = arith.constant 0 : index
    %21 = vector.load %arg6[%c0_7, %c0_8] : memref<8x256xf32, #tpu.memory_space<vmem>>, vector<8x256xf32>
    tpu.vector_store %arg6[%c0_7, %c0_8], %20 {strides = array<i32>} : memref<8x256xf32, #tpu.memory_space<vmem>>, vector<8x256xf32>,
    %c0_i32_9 = arith.constant 0 : i32
    %22 = arith.cmpi eq, %arg1, %c0_i32_9 : i32
    %23 = arith.extui %22 : i1 to i32
    %c0_i32_10 = arith.constant 0 : i32
    %24 = arith.cmpi ne, %23, %c0_i32_10 : i32
    scf.if %24 {
      %c0_11 = arith.constant 0 : index
      %c0_12 = arith.constant 0 : index
      %25 = vector.load %arg6[%c0_11, %c0_12] : memref<8x256xf32, #tpu.memory_space<vmem>>, vector<8x256xf32>
      %c0_13 = arith.constant 0 : index
      %c0_14 = arith.constant 0 : index
      %26 = vector.load %arg4[%c0_13, %c0_14] : memref<1x256xf32, #tpu.memory_space<vmem>>, vector<1x256xf32>
      %27 = vector.broadcast %26 : vector<1x256xf32> to vector<8x256xf32>
      %28 = arith.mulf %25, %27 : vector<8x256xf32>
      %29 = vector.shape_cast %28 : vector<8x256xf32> to vector<1x8x256xf32>
      %cst_15 = arith.constant dense<0.000000e+00> : vector<1xf32>
      %30 = vector.multi_reduction <add>, %29, %cst_15 [1, 2] : vector<1x8x256xf32> to vector<1xf32>
      %31 = vector.shape_cast %30 : vector<1xf32> to vector<1x1x1xf32>
      %32 = vector.extract %31[0, 0, 0] : f32 from vector<1x1x1xf32>
      %c0_16 = arith.constant 0 : index
      %c0_17 = arith.constant 0 : index
      %33 = memref.load %arg5[%c0_16, %c0_17] : memref<1x1xf32, #tpu.memory_space<smem>>
      memref.store %32, %arg5[%c0_16, %c0_17] : memref<1x1xf32, #tpu.memory_space<smem>>
    } else {
    }
    return
  }
  func.func @transform_0(%arg0: i32, %arg1: i32) -> (i32, i32) {
    %c1_i32 = arith.constant 1 : i32
    %0 = arith.muli %arg0, %c1_i32 : i32
    %1 = arith.addi %0, %arg1 : i32
    %c0_i32 = arith.constant 0 : i32
    %2 = arith.minsi %1, %c0_i32 : i32
    %c0_i32_0 = arith.constant 0 : i32
    %c0_i32_1 = arith.constant 0 : i32
    return %2, %c0_i32_0 : i32, i32
  }
  func.func @transform_1(%arg0: i32, %arg1: i32) -> (i32, i32) {
    %c1_i32 = arith.constant 1 : i32
    %0 = arith.muli %arg0, %c1_i32 : i32
    %1 = arith.addi %0, %arg1 : i32
    %c0_i32 = arith.constant 0 : i32
    %2 = arith.minsi %1, %c0_i32 : i32
    %c0_i32_0 = arith.constant 0 : i32
    %c0_i32_1 = arith.constant 0 : i32
    return %2, %c0_i32_0 : i32, i32
  }
  func.func @transform_2(%arg0: i32, %arg1: i32) -> (i32, i32) {
    %c0_i32 = arith.constant 0 : i32
    %c0_i32_0 = arith.constant 0 : i32
    %c0_i32_1 = arith.constant 0 : i32
    return %c0_i32, %c0_i32_0 : i32, i32
  }
  func.func @transform_3(%arg0: i32, %arg1: i32) -> (i32, i32) {
    %c0_i32 = arith.constant 0 : i32
    %c0_i32_0 = arith.constant 0 : i32
    return %arg0, %c0_i32 : i32, i32
  }
}

</mosaic_0001>

<bundles_post_ra>
// kernel: tpu_custom_call.1
= control target key start
LH: loop header
LB: loop body
LE: loop exit
PB: predicated region body
PF: predicated region fallthrough
CT: control target
= control target key end

     0   :  { %8 = vsyncpa [#allocation4], 0  ;;  %s325_s0 = inlined_call_operand.hbm [shape: f32[2,256], index: 0, kind: input, shape index: {}]   ;;  %s326_s1 = inlined_call_operand.hbm [shape: f32[2,256], index: 1, kind: input, shape index: {}]   ;;  %s327_s2 = inlined_call_operand.vmem [shape: f32[1,256], index: 2, kind: input, shape index: {}]   ;;  %s328_s3 = inlined_call_operand.hbm [shape: f32[1,1], index: 3, kind: output, shape index: {}]  }
   0x1   :  { %9 = vsyncpa [#allocation7], 0 }
   0x2   :  { %10 = vsyncpa [#allocation5], 0 }
   0x3   :  { %22 = vsyncadd [#allocation4], 192  ;;  %s260_s12 = smov [#allocation3]   ;;  %s200_s16 = scalar_lea.hbm %s325_s0, 64 }
   0x4   :  { %s28_s13 = sshll.u32 %s260_s12, 4  ;;  %p201_p0 = scmp.ne.s32.totalorder %s325_s0, %s200_s16  ;;  %s29_s13 = int_to_ptr.vmem [resolvable:$true] %s28_s13 }
   0x5   :  { %p204_p1 = scmp.lt.u32.totalorder %s200_s16, %s325_s0 }
   0x7   :  { %p206_p2 = pnand %p204_p1, %p201_p0 }
   0x9   :  { %209 = shalt.err (!%p206_p2)
}
   0xa   :  { %s210_s21 = scalar_lea.vmem %s29_s13, 64  ;;  %s214_s22 = scalar_lea.vmem %s29_s13, 256 }
   0xb   :  { %p211_p3 = scmp.ne.s32.totalorder %s29_s13, %s210_s21  ;;  %p215_p4 = scmp.lt.s32.totalorder %s29_s13, %s29_s13 }
   0xc   :  { %p216_p5 = scmp.lt.s32.totalorder %s214_s22, %s210_s21 }
   0xe   :  { %p217_p6 = por %p216_p5, %p215_p4 }
  0x10   :  { %p218_p7 = pnand %p217_p6, %p211_p3 }
  0x12   :  { %221 = shalt.err (!%p218_p7)
}
  0x13   :  { %s261_s23 = smov 64   ;;  %s262_s24 = smov 4  }
  0x14   :  { %34 = dma.hbm_to_vmem [thread:$0]  %s325_s0, 64, %s29_s13, [#allocation4], %s261_s23, %s261_s23, %s262_s24  }
  0x15   :  { %46 = vsyncadd [#allocation7], 192  ;;  %s263_s27 = smov [#allocation6]   ;;  %s222_s4 = scalar_lea.hbm %s326_s1, 64 }
  0x16   :  { %s52_s28 = sshll.u32 %s263_s27, 4  ;;  %p223_p8 = scmp.ne.s32.totalorder %s326_s1, %s222_s4  ;;  %s53_s28 = int_to_ptr.vmem [resolvable:$true] %s52_s28 }
  0x17   :  { %p226_p9 = scmp.lt.u32.totalorder %s222_s4, %s326_s1 }
  0x19   :  { %p228_p10 = pnand %p226_p9, %p223_p8 }
  0x1b   :  { %231 = shalt.err (!%p228_p10)
}
  0x1c   :  { %s232_s9 = scalar_lea.vmem %s53_s28, 64  ;;  %s236_s0 = scalar_lea.vmem %s53_s28, 256 }
  0x1d   :  { %p233_p11 = scmp.ne.s32.totalorder %s53_s28, %s232_s9  ;;  %p237_p12 = scmp.lt.s32.totalorder %s53_s28, %s53_s28 }
  0x1e   :  { %p238_p13 = scmp.lt.s32.totalorder %s236_s0, %s232_s9 }
  0x20   :  { %p239_p0 = por %p238_p13, %p237_p12 }
  0x22   :  { %p240_p1 = pnand %p239_p0, %p233_p11 }
  0x24   :  { %243 = shalt.err (!%p240_p1)
}
  0x25   :  { %58 = dma.hbm_to_vmem [thread:$0]  %s326_s1, 64, %s53_s28, [#allocation7], %s261_s23, %s261_s23, %s262_s24  }
  0x26   :  { %254 = dma.done.wait [#allocation4], 256  }
  0x27   :  { %255 = vsyncadd [#allocation4], 4294967040 }
  0x28   :  { %256 = dma.done.wait [#allocation7], 256  }
  0x29   :  { %257 = vsyncadd [#allocation7], 4294967040  ;;  %v101_v0 = vlaneseq  ;;  %v264_v1 = vmov 1983009808   ;;  %v87_v5 = vld [vmem:[#allocation3] sm:$0xf] }
  0x2a   :  { %v113_v2 = vunpack.c.l.s4 %v264_v1  ;;  %v88_v6 = vld [vmem:[#allocation3 + $0x4] sm:$0xf]  ;;  %v89_v7 = vld [vmem:[#allocation3 + $0x8] sm:$0xf]  ;;  %v90_v8 = vld [vmem:[#allocation3 + $0xc] sm:$0xf] }
  0x2b   :  { %v102_v3 = vshrl.u32 %v101_v0, 7  ;;  %v91_v9 = vld [vmem:[#allocation6] sm:$0xf]  ;;  %v92_v10 = vld [vmem:[#allocation6 + $0x4] sm:$0xf]  ;;  %s244_s15 = scalar_lea.hbm %s328_s3, 16 }
  0x2c   :  { %v114_v4 = vunpack.c.0.s8 %v113_v2  ;;  %v93_v11 = vld [vmem:[#allocation6 + $0x8] sm:$0xf]  ;;  %v94_v12 = vld [vmem:[#allocation6 + $0xc] sm:$0xf]  ;;  %v95_v13 = vsub.f32 %v87_v5, %v91_v9  ;;  %v96_v14 = vsub.f32 %v88_v6, %v92_v10  ;;  %v147_v24 = vld [vmem:[%s327_s2] sm:$0x3]  ;;  %p245_p2 = scmp.ne.s32.totalorder %s328_s3, %s244_s15  ;;  %p248_p3 = scmp.lt.u32.totalorder %s244_s15, %s328_s3 }
  0x2d   :  { %v97_v16 = vsub.f32 %v89_v7, %v93_v11  ;;  %v98_v17 = vsub.f32 %v90_v8, %v94_v12  ;;  %v151_v21 = vsub.s32 0, %v102_v3  ;;  %v155_v22 = vsub.s32 1, %v102_v3 }
  0x2e   :  { %v117_v15 = vsub.s32 %v114_v4, %v102_v3  ;;  %v110_v18 = vcombine.low %v95_v13, %v96_v14  ;;  %vm105_vm0 = vcmp.lt.s32.totalorder %v102_v3, 2  ;;  %p250_p4 = pnand %p248_p3, %p245_p2 }
  0x2f   :  { %v111_v19 = vcombine.low %v97_v16, %v98_v17  ;;  %v152_v27 = vrot.slane %v147_v24, %v151_v21  ;;  %v156_v28 = vrot.slane %v147_v24, %v155_v22 }
  0x30   :  { %v118_v20 = vrot.slane %v110_v18, %v117_v15 }
  0x31   :  { %v125_v23 = vrot.slane %v111_v19, %v117_v15 }
  0x33   :  { %v126_v25 = vcombine.low %v118_v20, %v125_v23  ;;  %v127_v26 = vcombine.high %v118_v20, %v125_v23 }
  0x35   :  { %v130_v29 = vsel %vm105_vm0, %v126_v25, 0.0  ;;  %v131_v30 = vsel %vm105_vm0, %v127_v26, 0.0 }
  0x36   :  { %v132_v31 = vmul.f32 %v130_v29, %v130_v29  ;;  %v133_v32 = vmul.f32 %v131_v30, %v131_v30 }
  0x38   :  { %v159_v33 = vmul.f32 %v152_v27, %v132_v31  ;;  %v160_v34 = vmul.f32 %v156_v28, %v133_v32 }
  0x3a   :  { %v161_v35 = vadd.f32 %v160_v34, %v159_v33 }
  0x3c   :  { %162 = vadd.xlane.f32.xlu0 %v161_v35 }
  0xc9   :  { %v163_v36 = vpop.xlane.xlu0 %162 }
  0xca   :  { %v164_v37 = vrot.slane %v163_v36, 4 }
  0xcc   :  { %v165_v38 = vadd.f32 %v164_v37, %v163_v36 }
  0xce   :  { %v166_v39 = vrot.slane %v165_v38, 2 }
  0xd0   :  { %v167_v40 = vadd.f32 %v166_v39, %v165_v38 }
  0xd2   :  { %v168_v41 = vrot.slane %v167_v40, 1 }
  0xd4   :  { %v169_v42 = vadd.f32 %v168_v41, %v167_v40 }
  0xd6   :  { %192 = vpush %v169_v42 }
 0x107   :  { %s193_s2 = spop %192 }
 0x108   :  { %172 = sst [smem:[#allocation8]] %s193_s2 }
 0x109   :  { %253 = shalt.err (!%p250_p4)
}
 0x10a   :  { %s265_s20 = smov [#allocation8]  }
 0x10b   :  { %180 = dma.smem_to_hbm %s265_s20, 16, %s328_s3, [#allocation5]  }
 0x10c   :  { %258 = dma.done.wait [#allocation5], 16  }
 0x10d   :  { %259 = vsyncadd [#allocation5], 4294967280 }
 0x10e   :  { %184 = sfence }
 0x10f   :  { %185 = vsyncpa [#allocation4], 1 }
 0x110   :  { %186 = vsyncpa [#allocation7], 1 }
 0x111   :  { %187 = vsyncpa [#allocation5], 1 }

</bundles_post_ra>
